<compile_context>
chip_gen: v6e
topology: v6e:2x2x1
jax: 0.10.0
libtpu: 0.0.40
codegen_flags: <defaults>
</compile_context>

<pallas_src>
import functools
import math

import numpy as np
import jax
import jax.numpy as jnp
from jax.experimental import pallas as pl
from jax.experimental.pallas import tpu as pltpu


VMEM_LIMIT = 32 * 1024 * 1024   # explicit scoped-VMEM budget (fits v5e/v6e/v7x)

CFG = dict(
    IN_CHANNELS=4,
    BACKBONE_MID=16,
    BACKBONE_OUTPUT_DIM=32,
    MODEL_ASPP_OUTDIM=16,
    MODEL_ASPP_HASGLOBAL=True,
    MODEL_NUM_CLASSES=6,
    ASPP_RATES=(6, 12, 18, 24),
)


# ----------------------------------------------------------------------------
# Kernel 1: backbone conv1 as a packed-K im2col matmul (+bias+ReLU).
# One batch element per parallel grid step.
# ----------------------------------------------------------------------------
def _conv_relu_kernel(a_ref, w_ref, b_ref, o_ref):
    r = jnp.dot(a_ref[0], w_ref[...], preferred_element_type=jnp.float32)
    r = jnp.maximum(r + b_ref[...], 0.0)
    o_ref[0] = r.astype(o_ref.dtype)


def conv_relu(a, w, b):
    """a: (N, M, K) bf16 im2col rows; w: (K, 128) bf16; b: (1, 128) f32."""
    n, m, k = a.shape
    npad = w.shape[1]
    return pl.pallas_call(
        _conv_relu_kernel,
        out_shape=jax.ShapeDtypeStruct((n, m, npad), jnp.bfloat16),
        grid_spec=pltpu.PrefetchScalarGridSpec(
            num_scalar_prefetch=0,
            grid=(n,),
            in_specs=[
                pl.BlockSpec((1, m, k), lambda i: (i, 0, 0)),
                pl.BlockSpec((k, npad), lambda i: (0, 0)),
                pl.BlockSpec((1, npad), lambda i: (0, 0)),
            ],
            out_specs=pl.BlockSpec((1, m, npad), lambda i: (i, 0, 0)),
        ),
        compiler_params=pltpu.CompilerParams(
            dimension_semantics=("parallel",),
            vmem_limit_bytes=VMEM_LIMIT),
    )(a, w, b)


# ----------------------------------------------------------------------------
# Kernel 2: fused backbone-conv2 + ASPP + projection + cls + bilinear upsample.
# Activations are kept transposed (channels on sublanes, spatial on lanes) so
# every dot is a plain (rows=channels)x(cols=spatial) matmul and the final
# store is the NCHW result directly (8 x 256 dense lanes per batch element).
# ----------------------------------------------------------------------------
def _head_kernel(a2t_ref, w2t_ref, b2_ref, wbkt_ref, bbk_ref, wgt_ref, bg_ref,
                 pool_ref, wpbt_ref, wpgt_ref, bp_ref, wct_ref, bc_ref, rt_ref,
                 o_ref):
    # backbone conv2 (3x3 stride-2, K packed with all 9 taps) + ReLU
    f = jnp.dot(w2t_ref[...], a2t_ref[0], preferred_element_type=jnp.float32)
    f = jnp.maximum(f + b2_ref[...], 0.0)                       # (Cbb, S)
    fb = f.astype(jnp.bfloat16)

    # 4 dilated ASPP branches: centre tap only at this resolution -> one
    # stacked matmul over all four branches.  (BN = identity.)
    br = jnp.dot(wbkt_ref[...], fb, preferred_element_type=jnp.float32)
    br = jnp.maximum(br + bbk_ref[...], 0.0)                    # (4*Ca, S)

    # global-average-pool branch: mean over spatial + broadcast back done as
    # one constant matmul (every output column equals the spatial mean),
    # computed once per batch element - no replicated activation stream.
    gp = jnp.dot(f, pool_ref[...], preferred_element_type=jnp.float32)       # (Cbb, S)
    gb = jnp.dot(wgt_ref[...], gp.astype(jnp.bfloat16),
                 preferred_element_type=jnp.float32)
    gb = jnp.maximum(gb + bg_ref[...], 0.0)                     # (Ca, S)

    # channel concat + 1x1 projection + ReLU (concat folded into two dots)
    proj = jnp.dot(wpbt_ref[...], br.astype(jnp.bfloat16),
                   preferred_element_type=jnp.float32)
    proj = proj + jnp.dot(wpgt_ref[...], gb.astype(jnp.bfloat16),
                          preferred_element_type=jnp.float32)
    feat = jnp.maximum(proj + bp_ref[...], 0.0)                 # (Ca, S)

    # dropout(0.5) -> identity (inference); cls 1x1 conv in f32
    logits = jnp.dot(wct_ref[...], feat,
                     preferred_element_type=jnp.float32) + bc_ref[...]       # (Ncls8, S)

    # bilinear upsample (align_corners=True) as one constant matmul:
    # out[c, oh*W+ow] = sum_s logits[c, s] * Rt[s, oh*W+ow]
    o_ref[0] = jnp.dot(logits, rt_ref[...], preferred_element_type=jnp.float32)


def fused_head(a2t, pk):
    """a2t: (N, 9*Cmid, S) bf16 -> (N, Ncls8, H*W) f32 in CHW layout."""
    n, k2, s_in = a2t.shape
    cbb = pk["w2t"].shape[0]
    nbca = pk["wbkt"].shape[0]
    ca = pk["wpbt"].shape[0]
    ncls8 = pk["wct"].shape[0]
    s_out = pk["rt"].shape[1]
    return pl.pallas_call(
        _head_kernel,
        out_shape=jax.ShapeDtypeStruct((n, ncls8, s_out), jnp.float32),
        grid_spec=pltpu.PrefetchScalarGridSpec(
            num_scalar_prefetch=0,
            grid=(n,),
            in_specs=[
                pl.BlockSpec((1, k2, s_in), lambda i: (i, 0, 0)),
                pl.BlockSpec((cbb, k2), lambda i: (0, 0)),
                pl.BlockSpec((cbb, 1), lambda i: (0, 0)),
                pl.BlockSpec((nbca, cbb), lambda i: (0, 0)),
                pl.BlockSpec((nbca, 1), lambda i: (0, 0)),
                pl.BlockSpec((ca, cbb), lambda i: (0, 0)),
                pl.BlockSpec((ca, 1), lambda i: (0, 0)),
                pl.BlockSpec((s_in, s_in), lambda i: (0, 0)),
                pl.BlockSpec((ca, nbca), lambda i: (0, 0)),
                pl.BlockSpec((ca, ca), lambda i: (0, 0)),
                pl.BlockSpec((ca, 1), lambda i: (0, 0)),
                pl.BlockSpec((ncls8, ca), lambda i: (0, 0)),
                pl.BlockSpec((ncls8, 1), lambda i: (0, 0)),
                pl.BlockSpec((s_in, s_out), lambda i: (0, 0)),
            ],
            out_specs=pl.BlockSpec((1, ncls8, s_out), lambda i: (i, 0, 0)),
        ),
        compiler_params=pltpu.CompilerParams(
            dimension_semantics=("parallel",),
            vmem_limit_bytes=VMEM_LIMIT),
    )(a2t, pk["w2t"], pk["b2"], pk["wbkt"], pk["bbk"], pk["wgt"], pk["bg"],
      pk["pool"], pk["wpbt"], pk["wpgt"], pk["bp"], pk["wct"], pk["bc"],
      pk["rt"])


# ----------------------------------------------------------------------------
# JAX-level im2col for the 3x3 stride-2 pad-1 backbone convs (fuses into one
# XLA fusion; the conv math itself runs in the Pallas kernels above).
# ----------------------------------------------------------------------------
def _im2col_3x3_s2(xp, out_h, out_w):
    """xp: (N, Hp, Wp, C) zero-padded input -> (N, out_h*out_w, 9*C)."""
    n, _, _, c = xp.shape
    cols = []
    for ky in range(3):
        for kx in range(3):
            sl = xp[:, ky:ky + 2 * (out_h - 1) + 1:2,
                       kx:kx + 2 * (out_w - 1) + 1:2, :]
            cols.append(sl.reshape(n, out_h * out_w, c))
    return jnp.concatenate(cols, axis=-1)


# ----------------------------------------------------------------------------
# One-time parameter packing (outside the jitted forward).
# ----------------------------------------------------------------------------
def _bilinear_matrix(in_size, out_size):
    """(out_size, in_size) align_corners=True interpolation weights."""
    m = np.zeros((out_size, in_size), np.float32)
    for o in range(out_size):
        src = 0.0 if (out_size == 1 or in_size == 1) else \
            o * (in_size - 1) / (out_size - 1)
        i0 = min(int(math.floor(src)), in_size - 1)
        i1 = min(i0 + 1, in_size - 1)
        f = src - i0
        m[o, i0] += 1.0 - f
        m[o, i1] += f
    return m


def pack_params(p, in_hw):
    """Pack PyTorch-layout params into kernel-ready operands (runs once)."""
    h, w = in_hw
    hb, wb = h // 4, w // 4               # synthetic backbone output stride 4
    s = hb * wb
    rates = CFG["ASPP_RATES"]
    nb = len(rates)
    ca = CFG["MODEL_ASPP_OUTDIM"]
    cbb = CFG["BACKBONE_OUTPUT_DIM"]
    cmid = CFG["BACKBONE_MID"]
    ncls = CFG["MODEL_NUM_CLASSES"]
    ncls8 = ((ncls + 7) // 8) * 8
    assert CFG["MODEL_ASPP_HASGLOBAL"]
    # At this feature resolution every dilated 3x3 reduces to its centre tap.
    assert all(r >= hb and r >= wb for r in rates), \
        "fused head requires ASPP rate >= feature size"
    # TODO(synk): production resolutions need the general multi-tap ASPP path
    # (K-tiled accumulator grid, per-generation TM/TK table for v7x 64MiB VMEM).

    f32, bf16 = jnp.float32, jnp.bfloat16
    pk = {}
    # backbone conv1: packed-K (tap-major, cin-minor), N padded to 128 lanes.
    w1 = p["bb1_w"].reshape(-1, cmid)
    pk["w1"] = jnp.zeros((w1.shape[0], 128), f32).at[:, :cmid].set(w1).astype(bf16)
    pk["b1"] = jnp.zeros((1, 128), f32).at[0, :cmid].set(p["bb1_b"])
    # backbone conv2, transposed (channels-on-rows) layout.
    pk["w2t"] = p["bb2_w"].reshape(-1, cbb).T.astype(bf16)            # (Cbb, 9*Cmid)
    pk["b2"] = p["bb2_b"].reshape(cbb, 1).astype(f32)
    # 4 ASPP branch centre taps stacked on the output-channel (row) dim.
    pk["wbkt"] = jnp.concatenate(
        [p[f"aspp{i}_w"][1, 1] for i in range(nb)], axis=-1).T.astype(bf16)   # (4*Ca, Cbb)
    pk["bbk"] = jnp.concatenate(
        [p[f"aspp{i}_b"] for i in range(nb)]).reshape(nb * ca, 1).astype(f32)
    # global branch 1x1 conv + constant mean-pool/broadcast matrix.
    pk["wgt"] = p["asppg_w"][0, 0].T.astype(bf16)                     # (Ca, Cbb)
    pk["bg"] = p["asppg_b"].reshape(ca, 1).astype(f32)
    pk["pool"] = jnp.full((s, s), 1.0 / s, f32)
    # 1x1 projection over the concatenated branches, split branch/global.
    wproj = p["asppc_w"][0, 0]                                        # (nb*Ca+Ca, Ca)
    pk["wpbt"] = wproj[:nb * ca].T.astype(bf16)                       # (Ca, nb*Ca)
    pk["wpgt"] = wproj[nb * ca:].T.astype(bf16)                       # (Ca, Ca)
    pk["bp"] = p["asppc_b"].reshape(ca, 1).astype(f32)
    # cls conv, class dim padded to 8 sublanes (not 128 lanes).
    pk["wct"] = jnp.zeros((ncls8, ca), f32).at[:ncls].set(p["cls_w"][0, 0].T)
    pk["bc"] = jnp.zeros((ncls8, 1), f32).at[:ncls, 0].set(p["cls_b"])
    # bilinear (align_corners=True) upsample folded into a constant matrix.
    rt = np.kron(_bilinear_matrix(hb, h), _bilinear_matrix(wb, w)).T  # (S, H*W)
    pk["rt"] = jnp.asarray(rt, f32)
    return pk


# ----------------------------------------------------------------------------
# Synthetic parameters (kaiming fan_out like __initial__, zero bias).
# ----------------------------------------------------------------------------
def _kaiming(key, kh, kw, cin, cout):
    std = (2.0 / (kh * kw * cout)) ** 0.5
    return jax.random.normal(key, (kh, kw, cin, cout), jnp.float32) * std


def make_params(key):
    keys = jax.random.split(key, 12)
    c_in, c_mid = CFG["IN_CHANNELS"], CFG["BACKBONE_MID"]
    c_bb, c_aspp = CFG["BACKBONE_OUTPUT_DIM"], CFG["MODEL_ASPP_OUTDIM"]
    n_cls = CFG["MODEL_NUM_CLASSES"]
    nb = len(CFG["ASPP_RATES"])
    n_branch = nb + (1 if CFG["MODEL_ASPP_HASGLOBAL"] else 0)
    p = {}
    # TODO(synk): build_backbone() is not part of the provided module; a small
    # 2-conv stride-4 backbone with OUTPUT_DIM channels stands in for it.
    p["bb1_w"] = _kaiming(keys[0], 3, 3, c_in, c_mid)
    p["bb1_b"] = jnp.zeros((c_mid,), jnp.float32)
    p["bb2_w"] = _kaiming(keys[1], 3, 3, c_mid, c_bb)
    p["bb2_b"] = jnp.zeros((c_bb,), jnp.float32)
    for i in range(nb):
        p[f"aspp{i}_w"] = _kaiming(keys[2 + i], 3, 3, c_bb, c_aspp)
        p[f"aspp{i}_b"] = jnp.zeros((c_aspp,), jnp.float32)
    p["asppg_w"] = _kaiming(keys[6], 1, 1, c_bb, c_aspp)
    p["asppg_b"] = jnp.zeros((c_aspp,), jnp.float32)
    p["asppc_w"] = _kaiming(keys[7], 1, 1, n_branch * c_aspp, c_aspp)
    p["asppc_b"] = jnp.zeros((c_aspp,), jnp.float32)
    p["cls_w"] = _kaiming(keys[8], 1, 1, c_aspp, n_cls)
    p["cls_b"] = jnp.zeros((n_cls,), jnp.float32)
    return p


# ----------------------------------------------------------------------------
# Forward pass (mirrors deeplabv2.forward): backbone -> ASPP -> dropout ->
# cls_conv -> bilinear upsample (align_corners=True) -> NCHW logits.
# ----------------------------------------------------------------------------
def deeplabv2_forward(x_nchw, pk):
    n, _, h, w = x_nchw.shape
    ncls = CFG["MODEL_NUM_CLASSES"]
    cmid = CFG["BACKBONE_MID"]
    x = jnp.transpose(x_nchw, (0, 2, 3, 1)).astype(jnp.float32)        # NHWC

    # backbone conv1 (3x3, stride 2, pad 1) + ReLU  -- Pallas matmul kernel.
    h1, w1 = (h - 1) // 2 + 1, (w - 1) // 2 + 1
    xp = jnp.pad(x, ((0, 0), (1, 1), (1, 1), (0, 0)))
    a1 = _im2col_3x3_s2(xp, h1, w1).astype(jnp.bfloat16)               # (N, h1*w1, 9*Cin)
    f1 = conv_relu(a1, pk["w1"], pk["b1"])                             # (N, h1*w1, 128) bf16
    f1 = f1[..., :cmid].reshape(n, h1, w1, cmid)

    # conv2 + ASPP + projection + cls + bilinear upsample: one fused kernel.
    hb, wb_ = (h1 - 1) // 2 + 1, (w1 - 1) // 2 + 1
    f1p = jnp.pad(f1, ((0, 0), (1, 1), (1, 1), (0, 0)))
    a2 = _im2col_3x3_s2(f1p, hb, wb_)                                  # (N, S, 9*Cmid) bf16
    a2t = jnp.transpose(a2, (0, 2, 1))                                 # K-major for the head
    out = fused_head(a2t, pk)                                          # (N, 8, H*W) f32 (CHW)
    return out[:, :ncls, :].reshape(n, ncls, h, w)


if __name__ == "__main__":
    key = jax.random.PRNGKey(0)
    k_x, k_p = jax.random.split(key)

    x = jax.random.normal(k_x, (2, CFG["IN_CHANNELS"], 16, 16), jnp.float32)
    params = make_params(k_p)
    packed = pack_params(params, in_hw=(16, 16))    # one-time weight packing

    fwd = jax.jit(deeplabv2_forward)
    out = jax.block_until_ready(fwd(x, packed))

    assert out.shape == (2, CFG["MODEL_NUM_CLASSES"], 16, 16), out.shape
    assert bool(jnp.all(jnp.isfinite(out)))
    print("KERNEL_OK")
</pallas_src>

<mosaic_0001>
module attributes {stable_mosaic.version = 11 : i64} {
  func.func @_conv_relu_kernel(%arg0: i32, %arg1: memref<1x64x36xbf16, #tpu.memory_space<vmem>>, %arg2: memref<36x128xbf16, #tpu.memory_space<vmem>>, %arg3: memref<1x128xf32, #tpu.memory_space<vmem>>, %arg4: memref<1x64x128xbf16, #tpu.memory_space<vmem>>) attributes {dimension_semantics = [#tpu.dimension_semantics<parallel>], iteration_bounds = array<i64: 2>, scalar_prefetch = 0 : i64, scratch_operands = 0 : i64, tpu.core_type = #tpu.core_type<tc>, window_params = [{transform_indices = @transform_0, window_bounds = array<i64: 1, 64, 36>}, {pipeline_mode = #tpu.pipeline_mode<synchronous>, transform_indices = @transform_1, window_bounds = array<i64: 36, 128>}, {pipeline_mode = #tpu.pipeline_mode<synchronous>, transform_indices = @transform_2, window_bounds = array<i64: 1, 128>}, {transform_indices = @transform_3, window_bounds = array<i64: 1, 64, 128>}]} {
    %c0 = arith.constant 0 : index
    %c0_0 = arith.constant 0 : index
    %c0_1 = arith.constant 0 : index
    %0 = vector.load %arg1[%c0, %c0_0, %c0_1] : memref<1x64x36xbf16, #tpu.memory_space<vmem>>, vector<1x64x36xbf16>
    %1 = vector.shape_cast %0 : vector<1x64x36xbf16> to vector<64x36xbf16>
    %c0_2 = arith.constant 0 : index
    %c0_3 = arith.constant 0 : index
    %2 = vector.load %arg2[%c0_2, %c0_3] : memref<36x128xbf16, #tpu.memory_space<vmem>>, vector<36x128xbf16>
    %cst = arith.constant dense<0.000000e+00> : vector<64x128xf32>
    %3 = tpu.matmul %1, %2, %cst {dimension_numbers = #tpu.dot_dimension_numbers<[1], [0], [0], [1], [0, 0, 1, 1], [], []>} : vector<64x36xbf16>, vector<36x128xbf16>, vector<64x128xf32> -> vector<64x128xf32>
    %c0_4 = arith.constant 0 : index
    %c0_5 = arith.constant 0 : index
    %4 = vector.load %arg3[%c0_4, %c0_5] : memref<1x128xf32, #tpu.memory_space<vmem>>, vector<1x128xf32>
    %5 = vector.broadcast %4 : vector<1x128xf32> to vector<64x128xf32>
    %6 = arith.addf %3, %5 : vector<64x128xf32>
    %cst_6 = arith.constant 0.000000e+00 : f32
    %7 = vector.broadcast %cst_6 : f32 to vector<64x128xf32>
    %8 = arith.maximumf %6, %7 : vector<64x128xf32>
    %9 = arith.truncf %8 : vector<64x128xf32> to vector<64x128xbf16>
    %c0_7 = arith.constant 0 : index
    %c0_8 = arith.constant 0 : index
    %c0_9 = arith.constant 0 : index
    %10 = vector.load %arg4[%c0_7, %c0_8, %c0_9] : memref<1x64x128xbf16, #tpu.memory_space<vmem>>, vector<1x64x128xbf16>
    %11 = vector.shape_cast %10 : vector<1x64x128xbf16> to vector<64x128xbf16>
    %12 = vector.shape_cast %9 : vector<64x128xbf16> to vector<1x64x128xbf16>
    tpu.vector_store %arg4[%c0_7, %c0_8, %c0_9], %12 {strides = array<i32>} : memref<1x64x128xbf16, #tpu.memory_space<vmem>>, vector<1x64x128xbf16>,
    return
  }
  func.func @transform_0(%arg0: i32) -> (i32, i32, i32) {
    %c0_i32 = arith.constant 0 : i32
    %c0_i32_0 = arith.constant 0 : i32
    %c0_i32_1 = arith.constant 0 : i32
    return %arg0, %c0_i32, %c0_i32_0 : i32, i32, i32
  }
  func.func @transform_1(%arg0: i32) -> (i32, i32) {
    %c0_i32 = arith.constant 0 : i32
    %c0_i32_0 = arith.constant 0 : i32
    %c0_i32_1 = arith.constant 0 : i32
    return %c0_i32, %c0_i32_0 : i32, i32
  }
  func.func @transform_2(%arg0: i32) -> (i32, i32) {
    %c0_i32 = arith.constant 0 : i32
    %c0_i32_0 = arith.constant 0 : i32
    %c0_i32_1 = arith.constant 0 : i32
    return %c0_i32, %c0_i32_0 : i32, i32
  }
  func.func @transform_3(%arg0: i32) -> (i32, i32, i32) {
    %c0_i32 = arith.constant 0 : i32
    %c0_i32_0 = arith.constant 0 : i32
    %c0_i32_1 = arith.constant 0 : i32
    return %arg0, %c0_i32, %c0_i32_0 : i32, i32, i32
  }
}

module attributes {stable_mosaic.version = 11 : i64} {
  func.func @_head_kernel(%arg0: i32, %arg1: memref<1x144x16xbf16, #tpu.memory_space<vmem>>, %arg2: memref<32x144xbf16, #tpu.memory_space<vmem>>, %arg3: memref<32x1xf32, #tpu.memory_space<vmem>>, %arg4: memref<64x32xbf16, #tpu.memory_space<vmem>>, %arg5: memref<64x1xf32, #tpu.memory_space<vmem>>, %arg6: memref<16x32xbf16, #tpu.memory_space<vmem>>, %arg7: memref<16x1xf32, #tpu.memory_space<vmem>>, %arg8: memref<16x16xf32, #tpu.memory_space<vmem>>, %arg9: memref<16x64xbf16, #tpu.memory_space<vmem>>, %arg10: memref<16x16xbf16, #tpu.memory_space<vmem>>, %arg11: memref<16x1xf32, #tpu.memory_space<vmem>>, %arg12: memref<8x16xf32, #tpu.memory_space<vmem>>, %arg13: memref<8x1xf32, #tpu.memory_space<vmem>>, %arg14: memref<16x256xf32, #tpu.memory_space<vmem>>, %arg15: memref<1x8x256xf32, #tpu.memory_space<vmem>>) attributes {dimension_semantics = [#tpu.dimension_semantics<parallel>], iteration_bounds = array<i64: 2>, scalar_prefetch = 0 : i64, scratch_operands = 0 : i64, tpu.core_type = #tpu.core_type<tc>, window_params = [{transform_indices = @transform_0, window_bounds = array<i64: 1, 144, 16>}, {pipeline_mode = #tpu.pipeline_mode<synchronous>, transform_indices = @transform_1, window_bounds = array<i64: 32, 144>}, {pipeline_mode = #tpu.pipeline_mode<synchronous>, transform_indices = @transform_2, window_bounds = array<i64: 32, 1>}, {pipeline_mode = #tpu.pipeline_mode<synchronous>, transform_indices = @transform_3, window_bounds = array<i64: 64, 32>}, {pipeline_mode = #tpu.pipeline_mode<synchronous>, transform_indices = @transform_4, window_bounds = array<i64: 64, 1>}, {pipeline_mode = #tpu.pipeline_mode<synchronous>, transform_indices = @transform_5, window_bounds = array<i64: 16, 32>}, {pipeline_mode = #tpu.pipeline_mode<synchronous>, transform_indices = @transform_6, window_bounds = array<i64: 16, 1>}, {pipeline_mode = #tpu.pipeline_mode<synchronous>, transform_indices = @transform_7, window_bounds = array<i64: 16, 16>}, {pipeline_mode = #tpu.pipeline_mode<synchronous>, transform_indices = @transform_8, window_bounds = array<i64: 16, 64>}, {pipeline_mode = #tpu.pipeline_mode<synchronous>, transform_indices = @transform_9, window_bounds = array<i64: 16, 16>}, {pipeline_mode = #tpu.pipeline_mode<synchronous>, transform_indices = @transform_10, window_bounds = array<i64: 16, 1>}, {pipeline_mode = #tpu.pipeline_mode<synchronous>, transform_indices = @transform_11, window_bounds = array<i64: 8, 16>}, {pipeline_mode = #tpu.pipeline_mode<synchronous>, transform_indices = @transform_12, window_bounds = array<i64: 8, 1>}, {pipeline_mode = #tpu.pipeline_mode<synchronous>, transform_indices = @transform_13, window_bounds = array<i64: 16, 256>}, {transform_indices = @transform_14, window_bounds = array<i64: 1, 8, 256>}]} {
    %c0 = arith.constant 0 : index
    %c0_0 = arith.constant 0 : index
    %0 = vector.load %arg2[%c0, %c0_0] : memref<32x144xbf16, #tpu.memory_space<vmem>>, vector<32x144xbf16>
    %c0_1 = arith.constant 0 : index
    %c0_2 = arith.constant 0 : index
    %c0_3 = arith.constant 0 : index
    %1 = vector.load %arg1[%c0_1, %c0_2, %c0_3] : memref<1x144x16xbf16, #tpu.memory_space<vmem>>, vector<1x144x16xbf16>
    %2 = vector.shape_cast %1 : vector<1x144x16xbf16> to vector<144x16xbf16>
    %cst = arith.constant dense<0.000000e+00> : vector<32x16xf32>
    %3 = tpu.matmul %0, %2, %cst {dimension_numbers = #tpu.dot_dimension_numbers<[1], [0], [0], [1], [0, 0, 1, 1], [], []>} : vector<32x144xbf16>, vector<144x16xbf16>, vector<32x16xf32> -> vector<32x16xf32>
    %c0_4 = arith.constant 0 : index
    %c0_5 = arith.constant 0 : index
    %4 = vector.load %arg3[%c0_4, %c0_5] : memref<32x1xf32, #tpu.memory_space<vmem>>, vector<32x1xf32>
    %5 = vector.broadcast %4 : vector<32x1xf32> to vector<32x16xf32>
    %6 = arith.addf %3, %5 : vector<32x16xf32>
    %cst_6 = arith.constant 0.000000e+00 : f32
    %7 = vector.broadcast %cst_6 : f32 to vector<32x16xf32>
    %8 = arith.maximumf %6, %7 : vector<32x16xf32>
    %9 = arith.truncf %8 : vector<32x16xf32> to vector<32x16xbf16>
    %c0_7 = arith.constant 0 : index
    %c0_8 = arith.constant 0 : index
    %10 = vector.load %arg4[%c0_7, %c0_8] : memref<64x32xbf16, #tpu.memory_space<vmem>>, vector<64x32xbf16>
    %cst_9 = arith.constant dense<0.000000e+00> : vector<64x16xf32>
    %11 = tpu.matmul %10, %9, %cst_9 {dimension_numbers = #tpu.dot_dimension_numbers<[1], [0], [0], [1], [0, 0, 1, 1], [], []>} : vector<64x32xbf16>, vector<32x16xbf16>, vector<64x16xf32> -> vector<64x16xf32>
    %c0_10 = arith.constant 0 : index
    %c0_11 = arith.constant 0 : index
    %12 = vector.load %arg5[%c0_10, %c0_11] : memref<64x1xf32, #tpu.memory_space<vmem>>, vector<64x1xf32>
    %13 = vector.broadcast %12 : vector<64x1xf32> to vector<64x16xf32>
    %14 = arith.addf %11, %13 : vector<64x16xf32>
    %cst_12 = arith.constant 0.000000e+00 : f32
    %15 = vector.broadcast %cst_12 : f32 to vector<64x16xf32>
    %16 = arith.maximumf %14, %15 : vector<64x16xf32>
    %c0_13 = arith.constant 0 : index
    %c0_14 = arith.constant 0 : index
    %17 = vector.load %arg8[%c0_13, %c0_14] : memref<16x16xf32, #tpu.memory_space<vmem>>, vector<16x16xf32>
    %cst_15 = arith.constant dense<0.000000e+00> : vector<32x16xf32>
    %18 = tpu.matmul %8, %17, %cst_15 {dimension_numbers = #tpu.dot_dimension_numbers<[1], [0], [0], [1], [0, 0, 1, 1], [], []>} : vector<32x16xf32>, vector<16x16xf32>, vector<32x16xf32> -> vector<32x16xf32>
    %c0_16 = arith.constant 0 : index
    %c0_17 = arith.constant 0 : index
    %19 = vector.load %arg6[%c0_16, %c0_17] : memref<16x32xbf16, #tpu.memory_space<vmem>>, vector<16x32xbf16>
    %20 = arith.truncf %18 : vector<32x16xf32> to vector<32x16xbf16>
    %cst_18 = arith.constant dense<0.000000e+00> : vector<16x16xf32>
    %21 = tpu.matmul %19, %20, %cst_18 {dimension_numbers = #tpu.dot_dimension_numbers<[1], [0], [0], [1], [0, 0, 1, 1], [], []>} : vector<16x32xbf16>, vector<32x16xbf16>, vector<16x16xf32> -> vector<16x16xf32>
    %c0_19 = arith.constant 0 : index
    %c0_20 = arith.constant 0 : index
    %22 = vector.load %arg7[%c0_19, %c0_20] : memref<16x1xf32, #tpu.memory_space<vmem>>, vector<16x1xf32>
    %23 = vector.broadcast %22 : vector<16x1xf32> to vector<16x16xf32>
    %24 = arith.addf %21, %23 : vector<16x16xf32>
    %cst_21 = arith.constant 0.000000e+00 : f32
    %25 = vector.broadcast %cst_21 : f32 to vector<16x16xf32>
    %26 = arith.maximumf %24, %25 : vector<16x16xf32>
    %c0_22 = arith.constant 0 : index
    %c0_23 = arith.constant 0 : index
    %27 = vector.load %arg9[%c0_22, %c0_23] : memref<16x64xbf16, #tpu.memory_space<vmem>>, vector<16x64xbf16>
    %28 = arith.truncf %16 : vector<64x16xf32> to vector<64x16xbf16>
    %cst_24 = arith.constant dense<0.000000e+00> : vector<16x16xf32>
    %29 = tpu.matmul %27, %28, %cst_24 {dimension_numbers = #tpu.dot_dimension_numbers<[1], [0], [0], [1], [0, 0, 1, 1], [], []>} : vector<16x64xbf16>, vector<64x16xbf16>, vector<16x16xf32> -> vector<16x16xf32>
    %c0_25 = arith.constant 0 : index
    %c0_26 = arith.constant 0 : index
    %30 = vector.load %arg10[%c0_25, %c0_26] : memref<16x16xbf16, #tpu.memory_space<vmem>>, vector<16x16xbf16>
    %31 = arith.truncf %26 : vector<16x16xf32> to vector<16x16xbf16>
    %cst_27 = arith.constant dense<0.000000e+00> : vector<16x16xf32>
    %32 = tpu.matmul %30, %31, %cst_27 {dimension_numbers = #tpu.dot_dimension_numbers<[1], [0], [0], [1], [0, 0, 1, 1], [], []>} : vector<16x16xbf16>, vector<16x16xbf16>, vector<16x16xf32> -> vector<16x16xf32>
    %33 = arith.addf %29, %32 : vector<16x16xf32>
    %c0_28 = arith.constant 0 : index
    %c0_29 = arith.constant 0 : index
    %34 = vector.load %arg11[%c0_28, %c0_29] : memref<16x1xf32, #tpu.memory_space<vmem>>, vector<16x1xf32>
    %35 = vector.broadcast %34 : vector<16x1xf32> to vector<16x16xf32>
    %36 = arith.addf %33, %35 : vector<16x16xf32>
    %cst_30 = arith.constant 0.000000e+00 : f32
    %37 = vector.broadcast %cst_30 : f32 to vector<16x16xf32>
    %38 = arith.maximumf %36, %37 : vector<16x16xf32>
    %c0_31 = arith.constant 0 : index
    %c0_32 = arith.constant 0 : index
    %39 = vector.load %arg12[%c0_31, %c0_32] : memref<8x16xf32, #tpu.memory_space<vmem>>, vector<8x16xf32>
    %cst_33 = arith.constant dense<0.000000e+00> : vector<8x16xf32>
    %40 = tpu.matmul %39, %38, %cst_33 {dimension_numbers = #tpu.dot_dimension_numbers<[1], [0], [0], [1], [0, 0, 1, 1], [], []>} : vector<8x16xf32>, vector<16x16xf32>, vector<8x16xf32> -> vector<8x16xf32>
    %c0_34 = arith.constant 0 : index
    %c0_35 = arith.constant 0 : index
    %41 = vector.load %arg13[%c0_34, %c0_35] : memref<8x1xf32, #tpu.memory_space<vmem>>, vector<8x1xf32>
    %42 = vector.broadcast %41 : vector<8x1xf32> to vector<8x16xf32>
    %43 = arith.addf %40, %42 : vector<8x16xf32>
    %c0_36 = arith.constant 0 : index
    %c0_37 = arith.constant 0 : index
    %44 = vector.load %arg14[%c0_36, %c0_37] : memref<16x256xf32, #tpu.memory_space<vmem>>, vector<16x256xf32>
    %cst_38 = arith.constant dense<0.000000e+00> : vector<8x256xf32>
    %45 = tpu.matmul %43, %44, %cst_38 {dimension_numbers = #tpu.dot_dimension_numbers<[1], [0], [0], [1], [0, 0, 1, 1], [], []>} : vector<8x16xf32>, vector<16x256xf32>, vector<8x256xf32> -> vector<8x256xf32>
    %c0_39 = arith.constant 0 : index
    %c0_40 = arith.constant 0 : index
    %c0_41 = arith.constant 0 : index
    %46 = vector.load %arg15[%c0_39, %c0_40, %c0_41] : memref<1x8x256xf32, #tpu.memory_space<vmem>>, vector<1x8x256xf32>
    %47 = vector.shape_cast %46 : vector<1x8x256xf32> to vector<8x256xf32>
    %48 = vector.shape_cast %45 : vector<8x256xf32> to vector<1x8x256xf32>
    tpu.vector_store %arg15[%c0_39, %c0_40, %c0_41], %48 {strides = array<i32>} : memref<1x8x256xf32, #tpu.memory_space<vmem>>, vector<1x8x256xf32>,
    return
  }
  func.func @transform_0(%arg0: i32) -> (i32, i32, i32) {
    %c0_i32 = arith.constant 0 : i32
    %c0_i32_0 = arith.constant 0 : i32
    %c0_i32_1 = arith.constant 0 : i32
    return %arg0, %c0_i32, %c0_i32_0 : i32, i32, i32
  }
  func.func @transform_1(%arg0: i32) -> (i32, i32) {
    %c0_i32 = arith.constant 0 : i32
    %c0_i32_0 = arith.constant 0 : i32
    %c0_i32_1 = arith.constant 0 : i32
    return %c0_i32, %c0_i32_0 : i32, i32
  }
  func.func @transform_2(%arg0: i32) -> (i32, i32) {
    %c0_i32 = arith.constant 0 : i32
    %c0_i32_0 = arith.constant 0 : i32
    %c0_i32_1 = arith.constant 0 : i32
    return %c0_i32, %c0_i32_0 : i32, i32
  }
  func.func @transform_3(%arg0: i32) -> (i32, i32) {
    %c0_i32 = arith.constant 0 : i32
    %c0_i32_0 = arith.constant 0 : i32
    %c0_i32_1 = arith.constant 0 : i32
    return %c0_i32, %c0_i32_0 : i32, i32
  }
  func.func @transform_4(%arg0: i32) -> (i32, i32) {
    %c0_i32 = arith.constant 0 : i32
    %c0_i32_0 = arith.constant 0 : i32
    %c0_i32_1 = arith.constant 0 : i32
    return %c0_i32, %c0_i32_0 : i32, i32
  }
  func.func @transform_5(%arg0: i32) -> (i32, i32) {
    %c0_i32 = arith.constant 0 : i32
    %c0_i32_0 = arith.constant 0 : i32
    %c0_i32_1 = arith.constant 0 : i32
    return %c0_i32, %c0_i32_0 : i32, i32
  }
  func.func @transform_6(%arg0: i32) -> (i32, i32) {
    %c0_i32 = arith.constant 0 : i32
    %c0_i32_0 = arith.constant 0 : i32
    %c0_i32_1 = arith.constant 0 : i32
    return %c0_i32, %c0_i32_0 : i32, i32
  }
  func.func @transform_7(%arg0: i32) -> (i32, i32) {
    %c0_i32 = arith.constant 0 : i32
    %c0_i32_0 = arith.constant 0 : i32
    %c0_i32_1 = arith.constant 0 : i32
    return %c0_i32, %c0_i32_0 : i32, i32
  }
  func.func @transform_8(%arg0: i32) -> (i32, i32) {
    %c0_i32 = arith.constant 0 : i32
    %c0_i32_0 = arith.constant 0 : i32
    %c0_i32_1 = arith.constant 0 : i32
    return %c0_i32, %c0_i32_0 : i32, i32
  }
  func.func @transform_9(%arg0: i32) -> (i32, i32) {
    %c0_i32 = arith.constant 0 : i32
    %c0_i32_0 = arith.constant 0 : i32
    %c0_i32_1 = arith.constant 0 : i32
    return %c0_i32, %c0_i32_0 : i32, i32
  }
  func.func @transform_10(%arg0: i32) -> (i32, i32) {
    %c0_i32 = arith.constant 0 : i32
    %c0_i32_0 = arith.constant 0 : i32
    %c0_i32_1 = arith.constant 0 : i32
    return %c0_i32, %c0_i32_0 : i32, i32
  }
  func.func @transform_11(%arg0: i32) -> (i32, i32) {
    %c0_i32 = arith.constant 0 : i32
    %c0_i32_0 = arith.constant 0 : i32
    %c0_i32_1 = arith.constant 0 : i32
    return %c0_i32, %c0_i32_0 : i32, i32
  }
  func.func @transform_12(%arg0: i32) -> (i32, i32) {
    %c0_i32 = arith.constant 0 : i32
    %c0_i32_0 = arith.constant 0 : i32
    %c0_i32_1 = arith.constant 0 : i32
    return %c0_i32, %c0_i32_0 : i32, i32
  }
  func.func @transform_13(%arg0: i32) -> (i32, i32) {
    %c0_i32 = arith.constant 0 : i32
    %c0_i32_0 = arith.constant 0 : i32
    %c0_i32_1 = arith.constant 0 : i32
    return %c0_i32, %c0_i32_0 : i32, i32
  }
  func.func @transform_14(%arg0: i32) -> (i32, i32, i32) {
    %c0_i32 = arith.constant 0 : i32
    %c0_i32_0 = arith.constant 0 : i32
    %c0_i32_1 = arith.constant 0 : i32
    return %arg0, %c0_i32, %c0_i32_0 : i32, i32, i32
  }
}

</mosaic_0001>

<bundles_post_ra>
// kernel: deeplabv2_forward.2
= control target key start
LH: loop header
LB: loop body
LE: loop exit
PB: predicated region body
PF: predicated region fallthrough
CT: control target
= control target key end

     0   :  { %s548_s12 = smov 0   ;;  %s584_s0 = inlined_call_operand.vmem [shape: bf16[2,64,36], index: 0, kind: input, shape index: {}]   ;;  %s585_s1 = inlined_call_operand.vmem [shape: bf16[36,128], index: 1, kind: input, shape index: {}]   ;;  %s586_s2 = inlined_call_operand.vmem [shape: f32[1,128], index: 2, kind: input, shape index: {}]   ;;  %s587_s3 = inlined_call_operand.vmem [shape: bf16[2,64,128], index: 3, kind: output, shape index: {}]  }
   0x1 LB: > { %s412_s13 = sadd.s32 4294967295, %s526_s12   ;;  %p416_p0 = scmp.ge.s32.totalorder %s526_s12, 1  ;;  %s526_s12 = sphi %s548_s12, %s13_s12  }
   0x2   : > { %p137_p1 = scmp.lt.s32.totalorder %s526_s12, 3 }
   0x4   : > { %p138_p2 = pnand %p416_p0, %p137_p1 }
   0x5   : > { %p161_p3 = scmp.lt.s32.totalorder (!%p138_p2), %s412_s13, 1 }
   0x6   : > { %141 = sbr.rel (%p138_p2) target bundleno = 230 (0xe6), region = 32 }
   0xb   : > { %v513_v0 = vld [vmem:[%s585_s1 + $0x10] ss:$0 sps:$4 sm:$0x33]   ;;  %vm240_vm0 = vcmask 1041408   ;;  %v514_v1 = vld [vmem:[%s585_s1 + $0x8] sm:$0xff]   ;;  %s589_s13 = smov (!%p161_p3, %s412_s13), 1 }
   0xc   : > { %503 = vmatprep.subr.msk.bf16.mxu0 %vm240_vm0, %v513_v0  ;;  %504 = vmatprep.subr.msk.bf16.mxu1 %vm240_vm0, %v513_v0  ;;  %v242_v2 = vsel %vm240_vm0, %v513_v0, 0  ;;  %v515_v3 = vld [vmem:[%s585_s1] sm:$0xff]   ;;  %s443_s20 = sshll.u32 %s589_s13, 5  ;;  %vm227_vm1 = vcmask 293888  }
   0xd   : > { %484 = vmatpush3.bf16.msra.mxu0 %v242_v2  ;;  %500 = vmatpush3.bf16.msra.mxu1 %v242_v2  ;;  %s165_s23 = scalar_lea.vmem %s584_s0, %s443_s20  ;;  %v421_v8 = vld [vmem:[%s586_s2] ss:$0 sm:$0xff]  ;;  %s170_s28 = scalar_lea.vmem %s587_s3, %s443_s20 }
   0xe   : > { %485 = vmatprep.subr.bf16.mxu0 %v514_v1  ;;  %498 = vmatprep.subr.bf16.mxu1 %v514_v1  ;;  %v516_v4 = vld [vmem:[%s165_s23] sm:$0xff]   ;;  %v517_v5 = vld [vmem:[%s165_s23 + $0x10] sm:$0xff]   ;;  %v518_v6 = vld [vmem:[%s165_s23 + $0x8] sm:$0xff]  }
   0xf   : > { %489 = vmatprep.mubr.msk.bf16.mxu0 %vm227_vm1, %v516_v4  ;;  %493 = vmatprep.mubr.msk.bf16.mxu1 %vm227_vm1, %v517_v5  ;;  %v519_v7 = vld [vmem:[%s165_s23 + $0x18] sm:$0xff]  }
  0x11   : > { %486 = vmatpush3.bf16.msra.mxu0 %v514_v1  ;;  %501 = vmatpush3.bf16.msra.mxu1 %v514_v1 }
  0x12   : > { %487 = vmatprep.subr.bf16.mxu0 %v515_v3  ;;  %499 = vmatprep.subr.bf16.mxu1 %v515_v3 }
  0x15   : > { %488 = vmatpush3.bf16.msra.mxu0 %v515_v3  ;;  %502 = vmatpush3.bf16.msra.mxu1 %v515_v3 }
  0x18   : > { %490 = vmatmul.mubr.msk.bf16.vlgmr.msra.gmra.mxu0 %vm227_vm1, %v518_v6  ;;  %494 = vmatmul.mubr.msk.bf16.vlgmr.msra.gmra.mxu1 %vm227_vm1, %v519_v7 }
  0xd8   : > { %v491_v9 = vpop.f32.mrf.mxu0  ;;  %v495_v10 = vpop.f32.mrf.mxu1 }
  0xd9   : > { %v287_v11 = vadd.f32 %v491_v9, %v421_v8  ;;  %v303_v12 = vadd.f32 %v495_v10, %v421_v8 }
  0xda   : > { %v278_v13 = vpop.f32.mrf.mxu0  ;;  %v294_v14 = vpop.f32.mrf.mxu1 }
  0xdb   : > { %v279_v15 = vadd.f32 %v421_v8, %v278_v13  ;;  %v295_v16 = vadd.f32 %v421_v8, %v294_v14  ;;  %v311_v21 = vmax.f32 %v287_v11, 0.0  ;;  %v315_v22 = vmax.f32 %v303_v12, 0.0 }
  0xdc   : > { %v492_v17 = vpop.f32.mrf.mxu0  ;;  %v496_v18 = vpop.f32.mrf.mxu1 }
  0xdd   : > { %v290_v19 = vadd.f32 %v492_v17, %v421_v8  ;;  %v306_v20 = vadd.f32 %v496_v18, %v421_v8  ;;  %v309_v29 = vmax.f32 %v279_v15, 0.0  ;;  %v313_v30 = vmax.f32 %v295_v16, 0.0 }
  0xde   : > { %v281_v23 = vpop.f32.mrf.mxu0  ;;  %v297_v24 = vpop.f32.mrf.mxu1 }
  0xdf   : > { %v312_v25 = vmax.f32 %v290_v19, 0.0  ;;  %v316_v26 = vmax.f32 %v306_v20, 0.0  ;;  %v282_v27 = vadd.f32 %v421_v8, %v281_v23  ;;  %v298_v28 = vadd.f32 %v421_v8, %v297_v24 }
  0xe1   : > { %v461_v31 = vpack.c.bf16 %v312_v25, %v311_v21  ;;  %v471_v32 = vpack.c.bf16 %v316_v26, %v315_v22  ;;  %v310_v33 = vmax.f32 %v282_v27, 0.0  ;;  %v314_v34 = vmax.f32 %v298_v28, 0.0 }
  0xe3   : > { %473 = vst [vmem:[%s170_s28 + $0x8] sm:$0xff] %v461_v31   ;;  %475 = vst [vmem:[%s170_s28 + $0x18] sm:$0xff] %v471_v32   ;;  %v456_v35 = vpack.c.bf16 %v310_v33, %v309_v29  ;;  %v466_v36 = vpack.c.bf16 %v314_v34, %v313_v30 }
  0xe5   : > { %457 = vst [vmem:[%s170_s28] sm:$0xff] %v456_v35   ;;  %474 = vst [vmem:[%s170_s28 + $0x10] sm:$0xff] %v466_v36  }
  0xe6 PF: > { %s13_s12 = sadd.s32 1, %s526_s12  }
  0xe7   : > { %p10_p4 = scmp.ge.s32.totalorder %s13_s12, 4  }
  0xe9   :  { %12 = sbr.rel (!%p10_p4) target bundleno = 1 (0x1), region = 62 }

// kernel: deeplabv2_forward.3
= control target key start
LH: loop header
LB: loop body
LE: loop exit
PB: predicated region body
PF: predicated region fallthrough
CT: control target
= control target key end

     0   :  { %s1564_s29 = smov 0   ;;  %s1744_s0 = inlined_call_operand.vmem [shape: bf16[2,144,16], index: 0, kind: input, shape index: {}]   ;;  %s1745_s1 = inlined_call_operand.vmem [shape: bf16[32,144], index: 1, kind: input, shape index: {}]   ;;  %s1746_s2 = inlined_call_operand.vmem [shape: f32[32,1], index: 2, kind: input, shape index: {}]   ;;  %s1747_s3 = inlined_call_operand.vmem [shape: bf16[64,32], index: 3, kind: input, shape index: {}]   ;;  %s1748_s4 = inlined_call_operand.vmem [shape: f32[64,1], index: 4, kind: input, shape index: {}]   ;;  %s1749_s5 = inlined_call_operand.vmem [shape: bf16[16,32], index: 5, kind: input, shape index: {}]   ;;  %s1750_s6 = inlined_call_operand.vmem [shape: f32[16,1], index: 6, kind: input, shape index: {}]   ;;  %s1751_s7 = inlined_call_operand.vmem [shape: f32[16,16], index: 7, kind: input, shape index: {}]   ;;  %s1752_s8 = inlined_call_operand.vmem [shape: bf16[16,64], index: 8, kind: input, shape index: {}]   ;;  %s1753_s9 = inlined_call_operand.vmem [shape: bf16[16,16], index: 9, kind: input, shape index: {}]   ;;  %s1754_s10 = inlined_call_operand.vmem [shape: f32[16,1], index: 10, kind: input, shape index: {}]   ;;  %s1755_s11 = inlined_call_operand.vmem [shape: f32[8,16], index: 11, kind: input, shape index: {}]   ;;  %s1756_s12 = inlined_call_operand.vmem [shape: f32[8,1], index: 12, kind: input, shape index: {}]   ;;  %s1757_s13 = inlined_call_operand.vmem [shape: f32[16,256], index: 13, kind: input, shape index: {}]   ;;  %s1758_s14 = inlined_call_operand.vmem [shape: f32[2,8,256], index: 14, kind: output, shape index: {}]  }
   0x1 LB: > { %s1316_s30 = sadd.s32 4294967295, %s1484_s29   ;;  %p1320_p0 = scmp.ge.s32.totalorder %s1484_s29, 1  ;;  %s1484_s29 = sphi %s1564_s29, %s24_s29  }
   0x2   : > { %p412_p1 = scmp.lt.s32.totalorder %s1484_s29, 3 }
   0x4   : > { %p413_p2 = pnand %p1320_p0, %p412_p1 }
   0x5   : > { %p458_p3 = scmp.lt.s32.totalorder (!%p413_p2), %s1316_s30, 1 }
   0x6   : > { %416 = sbr.rel (%p413_p2) target bundleno = 1297 (0x511), region = 76 }
   0xb   : > { %v1486_v0 = vmov 0   ;;  %v1467_v1 = vld [vmem:[%s1745_s1 + $0x4] ss:$8 sps:$4 sm:$0xff]   ;;  %vm587_vm0 = vcmask 130048   ;;  %s1760_s30 = smov (!%p458_p3, %s1316_s30), 1  ;;  %v493_v2 = vld [vmem:[%s1746_s2 + $0x10] sm:$0xff] }
   0xc   : > { %594 = vmatprep.subr.bf16.mxu0 %v1486_v0  ;;  %1454 = vset.pattern.permute.xlu0 %v1486_v0  ;;  %v491_v3 = vld [vmem:[%s1746_s2] sm:$0xff]  ;;  %s1442_s21 = smul.u32 72, %s1760_s30  ;;  %v494_v4 = vld [vmem:[%s1746_s2 + $0x18] sm:$0xff]  ;;  %v492_v5 = vld [vmem:[%s1746_s2 + $0x8] sm:$0xff]  ;;  %vm725_vm1 = vcmask 261120   ;;  %v1487_v59 = vmov 0.0  }
   0xd   : > { %1455 = vset.pattern.permute.xlu1 %v1486_v0  ;;  %1337 = vmatprep.mubr.msk.bf16.mxu0 %vm587_vm0, %v1467_v1  ;;  %v663_v6 = vld [vmem:[%s1748_s4 + $0x30] sm:$0xff]  ;;  %v664_v8 = vld [vmem:[%s1748_s4 + $0x38] sm:$0xff]  ;;  %v661_v10 = vld [vmem:[%s1748_s4 + $0x20] sm:$0xff]  ;;  %vm1488_vm2 = vmmov 0   ;;  %vm1040_vm3 = vcmask 523264  }
   0xe   : > { %507 = vperm.xlu0 %1454, %v493_v2   ;;  %497 = vperm.xlu1 %1455, %v491_v3   ;;  %s1597_s28 = scalar_lea.vmem %s1744_s0, %s1442_s21  ;;  %v662_v11 = vld [vmem:[%s1748_s4 + $0x28] sm:$0xff]  ;;  %v659_v13 = vld [vmem:[%s1748_s4 + $0x10] sm:$0xff]  ;;  %v660_v14 = vld [vmem:[%s1748_s4 + $0x18] sm:$0xff] }
   0xf   : > { %v1456_v7 = vld [vmem:[%s1597_s28 + $0x38] sm:$0xff]   ;;  %v1457_v9 = vld [vmem:[%s1597_s28 + $0x30] sm:$0xff]   ;;  %v1458_v12 = vld [vmem:[%s1597_s28 + $0x28] sm:$0xff]  }
  0x10   : > { %595 = vmatpush1.bf16.msra.mxu0 %v1456_v7  ;;  %v1459_v15 = vld [vmem:[%s1597_s28 + $0x20] sm:$0xff]   ;;  %v1460_v17 = vld [vmem:[%s1597_s28 + $0x18] sm:$0xff]   ;;  %v658_v18 = vld [vmem:[%s1748_s4 + $0x8] sm:$0xff] }
  0x11   : > { %596 = vmatprep.subr.bf16.mxu0 %v1486_v0  ;;  %v657_v16 = vld [vmem:[%s1748_s4] sm:$0xff]  ;;  %v1461_v20 = vld [vmem:[%s1597_s28 + $0x10] sm:$0xff]   ;;  %v915_v21 = vld [vmem:[%s1750_s6 + $0x8] sm:$0xff] }
  0x12   : > { %512 = vperm.xlu0 %1454, %v494_v4   ;;  %502 = vperm.xlu1 %1455, %v492_v5   ;;  %v914_v19 = vld [vmem:[%s1750_s6] sm:$0xff]  ;;  %v1086_v22 = vld [vmem:[%s1754_s10 + $0x8] sm:$0xff]  ;;  %v1468_v29 = vld [vmem:[%s1745_s1 + $0x14] ss:$8 sps:$4 sm:$0xff]  }
  0x13   : > { %v1462_v23 = vld [vmem:[%s1597_s28 + $0x8] sm:$0xff]   ;;  %v1085_v24 = vld [vmem:[%s1754_s10] sm:$0xff]  ;;  %v1470_v30 = vld [vmem:[%s1745_s1 + $0x10] ss:$8 sps:$4 sm:$0xff]  }
  0x14   : > { %597 = vmatpush1.bf16.msra.mxu0 %v1457_v9  ;;  %v1102_v25 = vld [vmem:[%s1756_s12] sm:$0xff]  ;;  %v812_v54 = vld [vmem:[%s1751_s7 + $0x8] sm:$0xff]  ;;  %v1473_v56 = vld [vmem:[%s1747_s3 + $0x10] sm:$0xff]  }
  0x15   : > { %598 = vmatprep.subr.bf16.mxu0 %v1486_v0  ;;  %v1463_v26 = vld [vmem:[%s1597_s28] sm:$0xff]   ;;  %v1472_v55 = vld [vmem:[%s1747_s3 + $0x8] sm:$0xff]   ;;  %v1474_v58 = vld [vmem:[%s1747_s3 + $0x18] sm:$0xff]  }
  0x16   : > { %697 = vperm.xlu0 %1454, %v663_v6   ;;  %702 = vperm.xlu1 %1455, %v664_v8   ;;  %v1464_v27 = vld [vmem:[%s1597_s28 + $0x40] sm:$0xff]   ;;  %s1361_s28 = sshll.u32 %s1760_s30, 4 }
  0x17   : > { %v1465_v28 = vld [vmem:[%s1745_s1] ss:$8 sps:$4 sm:$0xff]   ;;  %s467_s23 = scalar_lea.vmem %s1758_s14, %s1361_s28 }
  0x18   : > { %599 = vmatpush1.bf16.msra.mxu0 %v1458_v12  ;;  %v1471_v31 = vld [vmem:[%s1747_s3] sm:$0xff]  }
  0x19   : > { %600 = vmatprep.subr.bf16.mxu0 %v1486_v0  ;;  %1391 = vmatprep.mubr.msk.bf16.mxu1 %vm725_vm1, %v1471_v31  ;;  %v811_v57 = vld [vmem:[%s1751_s7] sm:$0xff] }
  0x1a   : > { %687 = vperm.xlu0 %1454, %v661_v10   ;;  %692 = vperm.xlu1 %1455, %v662_v11  }
  0x1c   : > { %601 = vmatpush1.bf16.msra.mxu0 %v1459_v15 }
  0x1d   : > { %602 = vmatprep.subr.bf16.mxu0 %v1486_v0 }
  0x1e   : > { %677 = vperm.xlu0 %1454, %v659_v13   ;;  %682 = vperm.xlu1 %1455, %v660_v14  }
  0x20   : > { %603 = vmatpush1.bf16.msra.mxu0 %v1460_v17 }
  0x21   : > { %604 = vmatprep.subr.bf16.mxu0 %v1486_v0 }
  0x22   : > { %667 = vperm.xlu0 %1454, %v657_v16   ;;  %672 = vperm.xlu1 %1455, %v658_v18  }
  0x24   : > { %605 = vmatpush1.bf16.msra.mxu0 %v1461_v20 }
  0x25   : > { %606 = vmatprep.subr.bf16.mxu0 %v1486_v0 }
  0x26   : > { %918 = vperm.xlu0 %1454, %v914_v19   ;;  %923 = vperm.xlu1 %1455, %v915_v21  }
  0x28   : > { %607 = vmatpush1.bf16.msra.mxu0 %v1462_v23 }
  0x29   : > { %608 = vmatprep.subr.bf16.mxu0 %v1486_v0 }
  0x2a   : > { %1094 = vperm.xlu0 %1454, %v1086_v22   ;;  %1089 = vperm.xlu1 %1455, %v1085_v24  }
  0x2c   : > { %609 = vmatpush1.bf16.msra.mxu0 %v1463_v26 }
  0x2d   : > { %624 = vmatprep.subr.bf16.mxu0 %v1486_v0 }
  0x2e   : > { %1105 = vperm.xlu0 %1454, %v1102_v25  }
  0x30   : > { %625 = vmatpush2.bf16.msra.mxu0 %v1464_v27 }
  0x31   : > { %1423 = vmatprep.subr.bf16.mxu0 %v1487_v59 }
  0x33   : > { %627 = vmatmul.mubr.bf16.vlgmr.msra.gmra.mxu0 %v1465_v28 }
  0x34   : > { %1338 = vmatprep.mubr.msk.bf16.mxu0 %vm587_vm0, %v1468_v29 }
  0x3b   : > { %635 = vmatmul.mubr.bf16.gmra.mxu0 %v1470_v30 }
  0x3c   : > { %1431 = vmatprep.mubr.msk.bf16.mxu0 %vm1488_vm2, %v1487_v59 }
  0x89   : > { %v498_v34 = vpop.permute.xlu1 %497  ;;  %v508_v36 = vpop.permute.xlu0 %507 }
  0x8d   : > { %v503_v39 = vpop.permute.xlu1 %502  ;;  %v513_v43 = vpop.permute.xlu0 %512 }
  0x91   : > { %v703_v61 = vpop.permute.xlu1 %702  ;;  %v698_v63 = vpop.permute.xlu0 %697 }
  0x95   : > { %v693_v2 = vpop.permute.xlu1 %692  ;;  %v688_v4 = vpop.permute.xlu0 %687 }
  0x99   : > { %v683_v9 = vpop.permute.xlu1 %682  ;;  %v678_v15 = vpop.permute.xlu0 %677 }
  0x9d   : > { %v673_v23 = vpop.permute.xlu1 %672  ;;  %v668_v28 = vpop.permute.xlu0 %667 }
  0xf3   : > { %v628_v32 = vpop.f32.mrf.mxu0 }
  0xf4   : > { %v629_v45 = vadd.f32 %v628_v32, %v498_v34 }
  0xf5   : > { %v630_v33 = vpop.f32.mrf.mxu0 }
  0xf6   : > { %v643_v51 = vmax.f32 %v629_v45, 0.0 }
  0xf7   : > { %v631_v35 = vpop.f32.mrf.mxu0 }
  0xf8   : > { %v632_v41 = vadd.f32 %v631_v35, %v503_v39  ;;  %v1476_v39 = vld [vmem:[%s1752_s8] sm:$0xff]  }
  0xf9   : > { %v633_v37 = vpop.f32.mrf.mxu0 }
  0xfa   : > { %v644_v48 = vmax.f32 %v632_v41, 0.0  ;;  %v1475_v37 = vld [vmem:[%s1749_s5] sm:$0xff]   ;;  %v919_v41 = vpop.permute.xlu0 %918 }
  0xfb   : > { %v636_v38 = vpop.f32.mrf.mxu0 }
  0xfc   : > { %v637_v42 = vadd.f32 %v636_v38, %v508_v36  ;;  %v647_v53 = vpack.c.bf16 %v644_v48, %v643_v51 }
  0xfd   : > { %v638_v40 = vpop.f32.mrf.mxu0 }
  0xfe   : > { %v645_v49 = vmax.f32 %v637_v42, 0.0 }
  0xff   : > { %v639_v44 = vpop.f32.mrf.mxu0 }
 0x100   : > { %v640_v46 = vadd.f32 %v639_v44, %v513_v43  ;;  %v924_v44 = vpop.permute.xlu1 %923 }
 0x101   : > { %v641_v47 = vpop.f32.mrf.mxu0 }
 0x102   : > { %v646_v50 = vmax.f32 %v640_v46, 0.0 }
 0x104   : > { %v648_v52 = vpack.c.bf16 %v646_v50, %v645_v49 }
 0x106   : > { %1387 = vmatprep.subr.bf16.mxu1 %v648_v52 }
 0x107   : > { %1388 = vmatpush3.bf16.msra.mxu1 %v648_v52 }
 0x108   : > { %1389 = vmatprep.subr.bf16.mxu1 %v647_v53 }
 0x10b   : > { %1390 = vmatpush3.bf16.msra.mxu1 %v647_v53 }
 0x10c   : > { %1399 = vmatprep.subr.mxu1 %v812_v54 }
 0x10e   : > { %1392 = vmatmul.mubr.msk.bf16.vlgmr.msra.gmra.mxu1 %vm725_vm1, %v1472_v55 }
 0x10f   : > { %1400 = vmatpush3.msra.mxu1 %v812_v54  ;;  %1395 = vmatprep.mubr.msk.bf16.mxu1 %vm725_vm1, %v1473_v56 }
 0x110   : > { %1401 = vmatprep.subr.mxu1 %v811_v57 }
 0x111   : > { %1402 = vmatpush3.msra.mxu1 %v811_v57 }
 0x112   : > { %1409 = vmatprep.subr.bf16.mxu1 %v1487_v59 }
 0x116   : > { %1396 = vmatmul.mubr.msk.bf16.gmra.mxu1 %vm725_vm1, %v1474_v58 }
 0x117   : > { %1403 = vmatprep.mubr.msk.f32.mxu1 %vm587_vm0, %v643_v51  ;;  %v1477_v51 = vld [vmem:[%s1753_s9] sm:$0xff]  }
 0x11e   : > { %1404 = vmatmul.mubr.msk.f32.vlgmr.msra.gmra.mxu1 %vm587_vm0, %v644_v48 }
 0x11f   : > { %1406 = vmatprep.mubr.msk.f32.mxu1 %vm587_vm0, %v645_v49 }
 0x122   : > { %1407 = vmatmul.mubr.msk.f32.gmra.mxu1 %vm587_vm0, %v646_v50 }
 0x123   : > { %1413 = vmatprep.mubr.msk.bf16.mxu1 %vm1488_vm2, %v1487_v59 }
 0x1ce   : > { %v1393_v60 = vpop.f32.mrf.mxu1 }
 0x1cf   : > { %v781_v21 = vadd.f32 %v1393_v60, %v678_v15 }
 0x1d0   : > { %v772_v62 = vpop.f32.mrf.mxu1 }
 0x1d1   : > { %v805_v30 = vmax.f32 %v781_v21, 0.0  ;;  %v773_v31 = vadd.f32 %v772_v62, %v668_v28 }
 0x1d2   : > { %v1394_v0 = vpop.f32.mrf.mxu1 }
 0x1d3   : > { %v784_v17 = vadd.f32 %v1394_v0, %v683_v9  ;;  %v803_v35 = vmax.f32 %v773_v31, 0.0  ;;  %v1181_v9 = vld [vmem:[%s1757_s13] sm:$0xff] }
 0x1d4   : > { %v775_v1 = vpop.f32.mrf.mxu1 }
 0x1d5   : > { %v806_v25 = vmax.f32 %v784_v17, 0.0  ;;  %v776_v26 = vadd.f32 %v775_v1, %v673_v23 }
 0x1d6   : > { %v1397_v3 = vpop.f32.mrf.mxu1 }
 0x1d7   : > { %v797_v6 = vadd.f32 %v1397_v3, %v698_v63  ;;  %v980_v33 = vpack.c.bf16 %v806_v25, %v805_v30  ;;  %v804_v34 = vmax.f32 %v776_v26, 0.0  ;;  %v1090_v63 = vpop.permute.xlu1 %1089 }
 0x1d8   : > { %v788_v5 = vpop.f32.mrf.mxu1 }
 0x1d9   : > { %v809_v11 = vmax.f32 %v797_v6, 0.0  ;;  %v789_v12 = vadd.f32 %v788_v5, %v688_v4  ;;  %v979_v38 = vpack.c.bf16 %v804_v34, %v803_v35  ;;  %v1101_v5 = vld [vmem:[%s1755_s11] sm:$0xff]  ;;  %v1184_v6 = vld [vmem:[%s1757_s13 + $0x18] sm:$0xff] }
 0x1da   : > { %v1398_v7 = vpop.f32.mrf.mxu1 }
 0x1db   : > { %v800_v8 = vadd.f32 %v1398_v7, %v703_v61  ;;  %v807_v22 = vmax.f32 %v789_v12, 0.0  ;;  %v1095_v61 = vpop.permute.xlu0 %1094  ;;  %v1183_v7 = vld [vmem:[%s1757_s13 + $0x10] sm:$0xff] }
 0x1dc   : > { %v791_v10 = vpop.f32.mrf.mxu1 }
 0x1dd   : > { %v810_v13 = vmax.f32 %v800_v8, 0.0  ;;  %v792_v14 = vadd.f32 %v791_v10, %v693_v2  ;;  %v1182_v8 = vld [vmem:[%s1757_s13 + $0x8] sm:$0xff] }
 0x1de   : > { %v1405_v16 = vpop.f32.mrf.mxu1 }
 0x1df   : > { %v982_v18 = vpack.c.bf16 %v810_v13, %v809_v11  ;;  %v808_v19 = vmax.f32 %v792_v14, 0.0  ;;  %v1106_v10 = vpop.permute.xlu0 %1105 }
 0x1e0   : > { %v891_v20 = vpop.f32.mrf.mxu1 }
 0x1e1   : > { %1424 = vmatpush3.bf16.msra.mxu0 %v982_v18  ;;  %v981_v27 = vpack.c.bf16 %v808_v19, %v807_v22  ;;  %v912_v36 = vpack.c.bf16 %v1405_v16, %v891_v20 }
 0x1e2   : > { %v1408_v24 = vpop.f32.mrf.mxu1  ;;  %1425 = vmatprep.subr.bf16.mxu0 %v1487_v59 }
 0x1e4   : > { %v901_v29 = vpop.f32.mrf.mxu1 }
 0x1e5   : > { %v913_v32 = vpack.c.bf16 %v1408_v24, %v901_v29  ;;  %1426 = vmatpush3.bf16.msra.mxu0 %v981_v27 }
 0x1e6   : > { %1427 = vmatprep.subr.bf16.mxu0 %v1487_v59 }
 0x1e7   : > { %1410 = vmatpush3.bf16.msra.mxu1 %v913_v32 }
 0x1e8   : > { %1411 = vmatprep.subr.bf16.mxu1 %v1487_v59 }
 0x1e9   : > { %1428 = vmatpush3.bf16.msra.mxu0 %v980_v33 }
 0x1ea   : > { %1429 = vmatprep.subr.bf16.mxu0 %v1487_v59 }
 0x1eb   : > { %1412 = vmatpush3.bf16.msra.mxu1 %v912_v36 }
 0x1ec   : > { %1417 = vmatprep.subr.bf16.mxu1 %v1487_v59 }
 0x1ed   : > { %1430 = vmatpush3.bf16.msra.mxu0 %v979_v38 }
 0x1ee   : > { %1414 = vmatmul.mubr.msk.bf16.vlgmr.msra.gmra.mxu1 %vm725_vm1, %v1475_v37 }
 0x1ef   : > { %1419 = vmatprep.mubr.msk.bf16.mxu1 %vm1488_vm2, %v1487_v59 }
 0x1f0   : > { %1432 = vmatmul.mubr.msk.bf16.vlgmr.msra.gmra.mxu0 %vm1040_vm3, %v1476_v39 }
 0x2ae   : > { %v968_v40 = vpop.f32.mrf.mxu1 }
 0x2af   : > { %v969_v43 = vadd.f32 %v968_v40, %v919_v41 }
 0x2b0   : > { %v1415_v42 = vpop.f32.mrf.mxu1  ;;  %v1078_v52 = vpop.f32.mrf.mxu0 }
 0x2b1   : > { %v975_v48 = vmax.f32 %v969_v43, 0.0 }
 0x2b2   : > { %v971_v45 = vpop.f32.mrf.mxu1  ;;  %v1433_v53 = vpop.f32.mrf.mxu0 }
 0x2b3   : > { %v972_v46 = vadd.f32 %v971_v45, %v924_v44 }
 0x2b4   : > { %v1416_v47 = vpop.f32.mrf.mxu1  ;;  %v1081_v54 = vpop.f32.mrf.mxu0 }
 0x2b5   : > { %v976_v49 = vmax.f32 %v972_v46, 0.0 }
 0x2b6   : > { %v1434_v55 = vpop.f32.mrf.mxu0 }
 0x2b7   : > { %v985_v50 = vpack.c.bf16 %v976_v49, %v975_v48 }
 0x2b9   : > { %1418 = vmatpush3.bf16.msra.mxu1 %v985_v50 }
 0x2ba   : > { %1435 = vmatprep.subr.mxu1 %v1487_v59 }
 0x2bc   : > { %1420 = vmatmul.mubr.msk.bf16.vlgmr.msra.gmra.mxu1 %vm587_vm0, %v1477_v51 }
 0x2bd   : > { %1439 = vmatprep.mubr.msk.f32.mxu1 %vm1488_vm2, %v1487_v59 }
 0x37c   : > { %v1028_v56 = vpop.f32.mrf.mxu1 }
 0x37d   : > { %v1079_v58 = vadd.f32 %v1078_v52, %v1028_v56 }
 0x37e   : > { %v1421_v57 = vpop.f32.mrf.mxu1 }
 0x37f   : > { %v1097_v1 = vadd.f32 %v1090_v63, %v1079_v58 }
 0x380   : > { %v1031_v60 = vpop.f32.mrf.mxu1 }
 0x381   : > { %v1082_v62 = vadd.f32 %v1081_v54, %v1031_v60  ;;  %v1099_v4 = vmax.f32 %v1097_v1, 0.0 }
 0x382   : > { %v1422_v0 = vpop.f32.mrf.mxu1 }
 0x383   : > { %v1098_v2 = vadd.f32 %v1095_v61, %v1082_v62 }
 0x385   : > { %v1100_v3 = vmax.f32 %v1098_v2, 0.0 }
 0x387   : > { %1436 = vmatpush3.msra.mxu1 %v1100_v3 }
 0x388   : > { %1437 = vmatprep.subr.mxu1 %v1487_v59 }
 0x389   : > { %1438 = vmatpush3.msra.mxu1 %v1099_v4 }
 0x38a   : > { %1440 = vmatmul.mubr.msk.f32.vlgmr.msra.gmra.mxu1 %vm587_vm0, %v1101_v5  ;;  %1216 = vmatprep.subr.mxu1 %v1184_v6 }
 0x38b   : > { %1252 = vmatprep.mubr.f32.mxu1 %v1487_v59  ;;  %1217 = vmatpush1.msra.mxu1 %v1183_v7 }
 0x38c   : > { %1218 = vmatprep.subr.mxu1 %v1182_v8 }
 0x38d   : > { %1219 = vmatpush1.msra.mxu1 %v1181_v9 }
 0x44a   : > { %v1177_v11 = vpop.f32.mrf.mxu1 }
 0x44b   : > { %v1178_v12 = vadd.f32 %v1177_v11, %v1106_v10 }
 0x44c   : > { %v1441_v13 = vpop.f32.mrf.mxu1 }
 0x44d   : > { %1358 = vmatmul.mubr.msk.f32.vlgmr.msra.gmra.mxu1 %vm587_vm0, %v1178_v12 }
 0x50d   : > { %v1254_v59 = vpop.f32.mrf.mxu1 }
 0x50e   : > { %1259 = vst [vmem:[%s467_s23] sm:$0xff] %v1254_v59 }
 0x50f   : > { %v1256_v14 = vpop.f32.mrf.mxu1 }
 0x510   : > { %1260 = vst [vmem:[%s467_s23 + $0x8] sm:$0xff] %v1256_v14 }
 0x511 PF: > { %s24_s29 = sadd.s32 1, %s1484_s29  }
 0x512   : > { %p21_p4 = scmp.ge.s32.totalorder %s24_s29, 4  }
 0x514   :  { %23 = sbr.rel (!%p21_p4) target bundleno = 1 (0x1), region = 106 }

</bundles_post_ra>
